<compile_context>
chip_gen: v7x
topology: tpu7x:2x2x1
jax: 0.10.0
libtpu: 0.0.40
codegen_flags: <defaults>
</compile_context>

<pallas_src>
import functools

import jax
import jax.numpy as jnp
from jax.experimental import pallas as pl
from jax.experimental.pallas import tpu as pltpu


# ----------------------------------------------------------------------------
# Pallas kernel: one batch element per grid step, channel-first [C, H*W].
# ----------------------------------------------------------------------------
def _im2col(xflat, H, W, K):
    """Build the [K*K*Cpad, H*W] im2col matrix from a flat padded image.

    xflat: [Cpad, (H + 1 + rb)*W + 2] -- channel-first, one zero row on top,
    rb zero rows at the bottom, and one extra zero element at each end of the
    flattened row-major spatial axis.  Tap (ky, kx) of a stride-1 conv with
    padding=1 is the contiguous lane slice starting at ky*W + kx; taps that
    read across a row boundary are zeroed with an iota mask.
    """
    Cpad = xflat.shape[0]
    HW = H * W
    col = jax.lax.broadcasted_iota(jnp.int32, (Cpad, HW), 1) % W
    pieces = []
    for ky in range(K):
        for kx in range(K):
            s = ky * W + kx
            t = xflat[:, s:s + HW]
            if kx == 0:                       # source column = x - 1 < 0
                t = jnp.where(col >= 1, t, 0)
            elif kx >= 2:                     # source column = x + kx - 1 >= W
                t = jnp.where(col <= W - kx, t, 0)
            pieces.append(t)
    return jnp.concatenate(pieces, axis=0)


def octconv_kernel(hfp_ref, lfp_ref,
                   w_hh_ref, w_thl_ref, w_ll_ref, w_lh_ref,
                   b_hh_ref, b_thl_ref, b_ll_ref, b_lh_ref,
                   hh_ref, thl_ref, ll_ref, lh_ref,
                   *, Hh, Wh, Hl, Wl):
    # 4x4 taps for the HF input: the 3x3 HtoH weights are zero-padded to 4x4,
    # and the extra taps carry the folded (avg-pool o conv3x3) HtoL weights.
    xcol_h = _im2col(hfp_ref[...], Hh, Wh, 4)      # [16*Cph, Hh*Wh]
    # 3x3 taps for the LF input.
    xcol_l = _im2col(lfp_ref[...], Hl, Wl, 3)      # [ 9*Cpl, Hl*Wl]

    # HtoH: 3x3 conv, one matmul, K = 16*Cph (zero-padded taps contribute 0).
    hh_ref[...] = (jnp.dot(w_hh_ref[...], xcol_h,
                           preferred_element_type=jnp.float32) + b_hh_ref[...])
    # HtoL path at full resolution: conv1x1(avgpool2(HtoH)) == 4x4 conv with
    # weights folded in the glue; glue keeps every other row/column.
    thl_ref[...] = (jnp.dot(w_thl_ref[...], xcol_h,
                            preferred_element_type=jnp.float32) + b_thl_ref[...])
    # LtoL: 3x3 conv.
    ll_ref[...] = (jnp.dot(w_ll_ref[...], xcol_l,
                           preferred_element_type=jnp.float32) + b_ll_ref[...])
    # LtoH before upsampling: conv1x1(LtoL) == 3x3 conv with folded weights.
    lh_ref[...] = (jnp.dot(w_lh_ref[...], xcol_l,
                           preferred_element_type=jnp.float32) + b_lh_ref[...])


# ----------------------------------------------------------------------------
# Glue: layout conversion, padding, weight folding (all pure data movement /
# tiny trace-time weight math -- every conv/pool FLOP runs in the kernel).
# ----------------------------------------------------------------------------
def _round_up(x, m):
    return (x + m - 1) // m * m


def _flat_pad(x_nchw, cpad, rows_bottom, dtype):
    """[B,C,H,W] -> [B, cpad, (H+1+rows_bottom)*W + 2] row-padded flat layout."""
    B, C, H, W = x_nchw.shape
    xp = jnp.pad(x_nchw, ((0, 0), (0, cpad - C), (1, rows_bottom), (0, 0)))
    xf = xp.reshape(B, cpad, (H + 1 + rows_bottom) * W)
    return jnp.pad(xf, ((0, 0), (0, 0), (1, 1))).astype(dtype)


def _pack_weight(w_oikk, cpad, dtype):
    """[O, I, K, K] -> [O, K*K*cpad], matching the kernel's tap ordering."""
    O, I, K, _ = w_oikk.shape
    wp = jnp.pad(w_oikk, ((0, 0), (0, cpad - I), (0, 0), (0, 0)))
    return jnp.transpose(wp, (0, 2, 3, 1)).reshape(O, K * K * cpad).astype(dtype)


def _box2x2(w):
    """3x3 conv weight -> 4x4 weight of (2x2 avg-pool o 3x3 conv)."""
    pads = (((0, 1), (0, 1)), ((1, 0), (0, 1)), ((0, 1), (1, 0)), ((1, 0), (1, 0)))
    acc = 0.0
    for py, px in pads:
        acc = acc + jnp.pad(w, ((0, 0), (0, 0), py, px))
    return 0.25 * acc


@functools.partial(jax.jit, static_argnames=("compute_dtype",))
def oct_conv_pallas(hf_nchw, lf_nchw, params, compute_dtype=jnp.float32):
    B, Cih, Hh, Wh = hf_nchw.shape
    _, Cil, Hl, Wl = lf_nchw.shape
    Coh = params['w_hh'].shape[0]
    Col = params['w_ll'].shape[0]
    HWh, HWl = Hh * Wh, Hl * Wl

    # sublane granule of the compute dtype (8 for f32, 16 for bf16) so the
    # in-kernel tap concatenation stays tile-aligned.
    sub = 8 if jnp.dtype(compute_dtype).itemsize == 4 else 16
    Cph = _round_up(max(Cih, 1), sub)
    Cpl = _round_up(max(Cil, 1), sub)

    # ---- inputs: channel-first, row-padded, flattened spatial ----
    hfp = _flat_pad(hf_nchw, Cph, 3, compute_dtype)   # 4x4 taps need 3 bottom rows
    lfp = _flat_pad(lf_nchw, Cpl, 1, compute_dtype)   # 3x3 taps need 1 bottom row
    Lh, Ll = hfp.shape[-1], lfp.shape[-1]

    # ---- fold weights (in f32, then cast to the compute dtype) ----
    w_hh = params['w_hh']                      # [Coh, Cih, 3, 3]
    w_ll = params['w_ll']                      # [Col, Cil, 3, 3]
    w_hl = params['w_hl'][:, :, 0, 0]          # [Col, Coh]  (1x1 conv)
    w_lh = params['w_lh'][:, :, 0, 0]          # [Coh, Col]  (1x1 conv)
    b_hh, b_ll = params['b_hh'], params['b_ll']
    b_hl, b_lh = params['b_hl'], params['b_lh']

    # HtoH 3x3 embedded in the 4x4 tap basis.
    w_hh4 = jnp.pad(w_hh, ((0, 0), (0, 0), (0, 1), (0, 1)))
    # HtoL = conv1x1(avgpool2(HtoH))  ->  4x4 conv with folded weights/bias.
    w_thl4 = jnp.einsum('lo,oikj->likj', w_hl, _box2x2(w_hh))
    b_thl = w_hl @ b_hh + b_hl
    # LtoH (pre-upsample) = conv1x1(LtoL)  ->  3x3 conv with folded weights/bias.
    w_lh3 = jnp.einsum('ho,oikj->hikj', w_lh, w_ll)
    b_lh2 = w_lh @ b_ll + b_lh

    w_hh_m = _pack_weight(w_hh4, Cph, compute_dtype)     # [Coh, 16*Cph]
    w_thl_m = _pack_weight(w_thl4, Cph, compute_dtype)   # [Col, 16*Cph]
    w_ll_m = _pack_weight(w_ll, Cpl, compute_dtype)      # [Col,  9*Cpl]
    w_lh_m = _pack_weight(w_lh3, Cpl, compute_dtype)     # [Coh,  9*Cpl]

    def bias(v):
        return v.reshape(-1, 1).astype(jnp.float32)

    def bspec(shape):
        n = len(shape)
        return pl.BlockSpec((None,) + shape, lambda b, _n=n: (b,) + (0,) * _n)

    def cspec(shape):
        n = len(shape)
        return pl.BlockSpec(shape, lambda b, _n=n: (0,) * _n)

    kernel = functools.partial(octconv_kernel, Hh=Hh, Wh=Wh, Hl=Hl, Wl=Wl)

    hh, thl, ll, lh = pl.pallas_call(
        kernel,
        out_shape=(jax.ShapeDtypeStruct((B, Coh, HWh), jnp.float32),
                   jax.ShapeDtypeStruct((B, Col, HWh), jnp.float32),
                   jax.ShapeDtypeStruct((B, Col, HWl), jnp.float32),
                   jax.ShapeDtypeStruct((B, Coh, HWl), jnp.float32)),
        grid=(B,),
        in_specs=[
            bspec((Cph, Lh)),                 # hf, padded/flattened
            bspec((Cpl, Ll)),                 # lf, padded/flattened
            cspec((Coh, 16 * Cph)),           # w_hh (3x3 in 4x4 basis)
            cspec((Col, 16 * Cph)),           # w for folded HtoL path
            cspec((Col, 9 * Cpl)),            # w_ll
            cspec((Coh, 9 * Cpl)),            # w for folded LtoH path
            cspec((Coh, 1)),                  # b_hh
            cspec((Col, 1)),                  # b for folded HtoL path
            cspec((Col, 1)),                  # b_ll
            cspec((Coh, 1)),                  # b for folded LtoH path
        ],
        out_specs=(bspec((Coh, HWh)), bspec((Col, HWh)),
                   bspec((Col, HWl)), bspec((Coh, HWl))),
        compiler_params=pltpu.CompilerParams(
            dimension_semantics=("parallel",)),
    )(hfp, lfp, w_hh_m, w_thl_m, w_ll_m, w_lh_m,
      bias(b_hh), bias(b_thl), bias(b_ll), bias(b_lh2))

    # ---- glue: pure index remapping + two elementwise adds (no matmuls) ----
    # TODO(synk): the nearest-2x upsample / stride-2 subsample index remaps
    # (and the two cross-frequency adds that depend on them) stay in XLA glue;
    # stride-2 lane gathers have no reliably-lowering in-kernel equivalent.
    hh = hh.reshape(B, Coh, Hh, Wh)
    thl = thl.reshape(B, Col, Hh, Wh)
    ll = ll.reshape(B, Col, Hl, Wl)
    lh = lh.reshape(B, Coh, Hl, Wl)
    hf_out = hh + jnp.repeat(jnp.repeat(lh, 2, axis=2), 2, axis=3)
    lf_out = ll + thl[:, :, ::2, ::2]
    return hf_out, lf_out


# ----------------------------------------------------------------------------
# Pure-JAX reference (mirrors the PyTorch forward) for verification.
# ----------------------------------------------------------------------------
def _conv_ref(x, w, b, pad):
    out = jax.lax.conv_general_dilated(
        x, w, window_strides=(1, 1), padding=((pad, pad), (pad, pad)),
        dimension_numbers=('NCHW', 'OIHW', 'NCHW'))
    return out + b[None, :, None, None]


def _avg_pool2(x):
    B, C, H, W = x.shape
    return x.reshape(B, C, H // 2, 2, W // 2, 2).mean(axis=(3, 5))


def oct_conv_ref(hf, lf, params):
    oHtoH = _conv_ref(hf, params['w_hh'], params['b_hh'], 1)
    oLtoL = _conv_ref(lf, params['w_ll'], params['b_ll'], 1)
    oHtoL = _conv_ref(_avg_pool2(oHtoH), params['w_hl'], params['b_hl'], 0)
    lh = _conv_ref(oLtoL, params['w_lh'], params['b_lh'], 0)
    oLtoH = jnp.repeat(jnp.repeat(lh, 2, axis=2), 2, axis=3)
    return oHtoH + oLtoH, oLtoL + oHtoL


# ----------------------------------------------------------------------------
if __name__ == "__main__":
    # Config: in_channels=8, out_channels=8, kernel=3, stride=1, padding=1,
    # in_alpha=out_alpha=0.5 -> ch_in_hf=ch_in_lf=ch_out_hf=ch_out_lf=4.
    B = 2
    Cih = Cil = Coh = Col = 4
    Hh = Wh = 16
    Hl, Wl = Hh // 2, Wh // 2

    key = jax.random.PRNGKey(0)
    ks = jax.random.split(key, 10)
    params = {
        # PyTorch Conv2d weight layout: [Cout, Cin, kH, kW]
        'w_hh': jax.random.normal(ks[0], (Coh, Cih, 3, 3), jnp.float32) * 0.2,
        'b_hh': jax.random.normal(ks[1], (Coh,), jnp.float32) * 0.1,
        'w_ll': jax.random.normal(ks[2], (Col, Cil, 3, 3), jnp.float32) * 0.2,
        'b_ll': jax.random.normal(ks[3], (Col,), jnp.float32) * 0.1,
        'w_hl': jax.random.normal(ks[4], (Col, Coh, 1, 1), jnp.float32) * 0.2,
        'b_hl': jax.random.normal(ks[5], (Col,), jnp.float32) * 0.1,
        'w_lh': jax.random.normal(ks[6], (Coh, Col, 1, 1), jnp.float32) * 0.2,
        'b_lh': jax.random.normal(ks[7], (Coh,), jnp.float32) * 0.1,
    }

    hf = jax.random.normal(ks[8], (B, Cih, Hh, Wh), jnp.float32)
    lf = jax.random.normal(ks[9], (B, Cil, Hl, Wl), jnp.float32)

    hf_ref, lf_ref = oct_conv_ref(hf, lf, params)

    # f32 compute path (exact match to the module).
    hf_out, lf_out = oct_conv_pallas(hf, lf, params, compute_dtype=jnp.float32)
    jax.block_until_ready((hf_out, lf_out))
    assert hf_out.shape == (B, Coh, Hh, Wh)
    assert lf_out.shape == (B, Col, Hl, Wl)
    assert jnp.allclose(hf_out, hf_ref, atol=1e-3, rtol=1e-3)
    assert jnp.allclose(lf_out, lf_ref, atol=1e-3, rtol=1e-3)

    # bf16 compute path (f32 accumulation): half the HBM traffic, native MXU
    # rate on v6e/v7x.  Verified against the f32 reference at bf16 tolerance.
    hf_bf, lf_bf = oct_conv_pallas(hf, lf, params, compute_dtype=jnp.bfloat16)
    jax.block_until_ready((hf_bf, lf_bf))
    assert jnp.allclose(hf_bf, hf_ref, atol=5e-2, rtol=5e-2)
    assert jnp.allclose(lf_bf, lf_ref, atol=5e-2, rtol=5e-2)

    print("KERNEL_OK")
</pallas_src>

<mosaic_0001>
module attributes {stable_mosaic.version = 11 : i64} {
  func.func @octconv_kernel(%arg0: i32, %arg1: memref<1x8x322xf32, #tpu.memory_space<vmem>>, %arg2: memref<1x8x82xf32, #tpu.memory_space<vmem>>, %arg3: memref<4x128xf32, #tpu.memory_space<vmem>>, %arg4: memref<4x128xf32, #tpu.memory_space<vmem>>, %arg5: memref<4x72xf32, #tpu.memory_space<vmem>>, %arg6: memref<4x72xf32, #tpu.memory_space<vmem>>, %arg7: memref<4x1xf32, #tpu.memory_space<vmem>>, %arg8: memref<4x1xf32, #tpu.memory_space<vmem>>, %arg9: memref<4x1xf32, #tpu.memory_space<vmem>>, %arg10: memref<4x1xf32, #tpu.memory_space<vmem>>, %arg11: memref<1x4x256xf32, #tpu.memory_space<vmem>>, %arg12: memref<1x4x256xf32, #tpu.memory_space<vmem>>, %arg13: memref<1x4x64xf32, #tpu.memory_space<vmem>>, %arg14: memref<1x4x64xf32, #tpu.memory_space<vmem>>) attributes {dimension_semantics = [#tpu.dimension_semantics<parallel>], iteration_bounds = array<i64: 2>, scalar_prefetch = 0 : i64, scratch_operands = 0 : i64, tpu.core_type = #tpu.core_type<tc>, window_params = [{transform_indices = @transform_0, window_bounds = array<i64: 1, 8, 322>}, {transform_indices = @transform_1, window_bounds = array<i64: 1, 8, 82>}, {pipeline_mode = #tpu.pipeline_mode<synchronous>, transform_indices = @transform_2, window_bounds = array<i64: 4, 128>}, {pipeline_mode = #tpu.pipeline_mode<synchronous>, transform_indices = @transform_3, window_bounds = array<i64: 4, 128>}, {pipeline_mode = #tpu.pipeline_mode<synchronous>, transform_indices = @transform_4, window_bounds = array<i64: 4, 72>}, {pipeline_mode = #tpu.pipeline_mode<synchronous>, transform_indices = @transform_5, window_bounds = array<i64: 4, 72>}, {pipeline_mode = #tpu.pipeline_mode<synchronous>, transform_indices = @transform_6, window_bounds = array<i64: 4, 1>}, {pipeline_mode = #tpu.pipeline_mode<synchronous>, transform_indices = @transform_7, window_bounds = array<i64: 4, 1>}, {pipeline_mode = #tpu.pipeline_mode<synchronous>, transform_indices = @transform_8, window_bounds = array<i64: 4, 1>}, {pipeline_mode = #tpu.pipeline_mode<synchronous>, transform_indices = @transform_9, window_bounds = array<i64: 4, 1>}, {transform_indices = @transform_10, window_bounds = array<i64: 1, 4, 256>}, {transform_indices = @transform_11, window_bounds = array<i64: 1, 4, 256>}, {transform_indices = @transform_12, window_bounds = array<i64: 1, 4, 64>}, {transform_indices = @transform_13, window_bounds = array<i64: 1, 4, 64>}]} {
    %c0 = arith.constant 0 : index
    %c0_0 = arith.constant 0 : index
    %c0_1 = arith.constant 0 : index
    %0 = vector.load %arg1[%c0, %c0_0, %c0_1] : memref<1x8x322xf32, #tpu.memory_space<vmem>>, vector<1x8x322xf32>
    %1 = vector.shape_cast %0 : vector<1x8x322xf32> to vector<8x322xf32>
    %2 = tpu.iota {dimensions = array<i32: 1>} : vector<8x256xi32>
    %c16_i32 = arith.constant 16 : i32
    %c0_i32 = arith.constant 0 : i32
    %3 = arith.cmpi eq, %c16_i32, %c0_i32 : i32
    %c1_i32 = arith.constant 1 : i32
    %4 = arith.select %3, %c1_i32, %c16_i32 : i32
    %5 = vector.broadcast %4 : i32 to vector<8x256xi32>
    %6 = arith.remsi %2, %5 : vector<8x256xi32>
    %c0_i32_2 = arith.constant 0 : i32
    %7 = vector.broadcast %c0_i32_2 : i32 to vector<8x256xi32>
    %8 = arith.cmpi ne, %6, %7 : vector<8x256xi32>
    %c0_i32_3 = arith.constant 0 : i32
    %9 = vector.broadcast %c0_i32_3 : i32 to vector<8x256xi32>
    %10 = arith.cmpi slt, %6, %9 : vector<8x256xi32>
    %c0_i32_4 = arith.constant 0 : i32
    %11 = arith.cmpi slt, %4, %c0_i32_4 : i32
    %12 = vector.broadcast %11 : i1 to vector<8x256xi1>
    %13 = vector.broadcast %12 : vector<8x256xi1> to vector<8x256xi1>
    %14 = arith.xori %10, %13 : vector<8x256xi1>
    %15 = arith.andi %14, %8 : vector<8x256xi1>
    %16 = vector.broadcast %4 : i32 to vector<8x256xi32>
    %17 = arith.addi %6, %16 : vector<8x256xi32>
    %18 = arith.select %15, %17, %6 : vector<8x256xi1>, vector<8x256xi32>
    %19 = vector.extract_strided_slice %1 {offsets = [0, 0], sizes = [8, 256], strides = [1, 1]} : vector<8x322xf32> to vector<8x256xf32>
    %c1_i32_5 = arith.constant 1 : i32
    %20 = vector.broadcast %c1_i32_5 : i32 to vector<8x256xi32>
    %21 = arith.cmpi sge, %18, %20 : vector<8x256xi32>
    %c0_i32_6 = arith.constant 0 : i32
    %22 = arith.sitofp %c0_i32_6 : i32 to f32
    %23 = vector.broadcast %22 : f32 to vector<8x256xf32>
    %24 = arith.select %21, %19, %23 : vector<8x256xi1>, vector<8x256xf32>
    %25 = vector.extract_strided_slice %1 {offsets = [0, 1], sizes = [8, 256], strides = [1, 1]} : vector<8x322xf32> to vector<8x256xf32>
    %26 = vector.extract_strided_slice %1 {offsets = [0, 2], sizes = [8, 256], strides = [1, 1]} : vector<8x322xf32> to vector<8x256xf32>
    %c14_i32 = arith.constant 14 : i32
    %27 = vector.broadcast %c14_i32 : i32 to vector<8x256xi32>
    %28 = arith.cmpi sle, %18, %27 : vector<8x256xi32>
    %c0_i32_7 = arith.constant 0 : i32
    %29 = arith.sitofp %c0_i32_7 : i32 to f32
    %30 = vector.broadcast %29 : f32 to vector<8x256xf32>
    %31 = arith.select %28, %26, %30 : vector<8x256xi1>, vector<8x256xf32>
    %32 = vector.extract_strided_slice %1 {offsets = [0, 3], sizes = [8, 256], strides = [1, 1]} : vector<8x322xf32> to vector<8x256xf32>
    %c13_i32 = arith.constant 13 : i32
    %33 = vector.broadcast %c13_i32 : i32 to vector<8x256xi32>
    %34 = arith.cmpi sle, %18, %33 : vector<8x256xi32>
    %c0_i32_8 = arith.constant 0 : i32
    %35 = arith.sitofp %c0_i32_8 : i32 to f32
    %36 = vector.broadcast %35 : f32 to vector<8x256xf32>
    %37 = arith.select %34, %32, %36 : vector<8x256xi1>, vector<8x256xf32>
    %38 = vector.extract_strided_slice %1 {offsets = [0, 16], sizes = [8, 256], strides = [1, 1]} : vector<8x322xf32> to vector<8x256xf32>
    %c1_i32_9 = arith.constant 1 : i32
    %39 = vector.broadcast %c1_i32_9 : i32 to vector<8x256xi32>
    %40 = arith.cmpi sge, %18, %39 : vector<8x256xi32>
    %c0_i32_10 = arith.constant 0 : i32
    %41 = arith.sitofp %c0_i32_10 : i32 to f32
    %42 = vector.broadcast %41 : f32 to vector<8x256xf32>
    %43 = arith.select %40, %38, %42 : vector<8x256xi1>, vector<8x256xf32>
    %44 = vector.extract_strided_slice %1 {offsets = [0, 17], sizes = [8, 256], strides = [1, 1]} : vector<8x322xf32> to vector<8x256xf32>
    %45 = vector.extract_strided_slice %1 {offsets = [0, 18], sizes = [8, 256], strides = [1, 1]} : vector<8x322xf32> to vector<8x256xf32>
    %c14_i32_11 = arith.constant 14 : i32
    %46 = vector.broadcast %c14_i32_11 : i32 to vector<8x256xi32>
    %47 = arith.cmpi sle, %18, %46 : vector<8x256xi32>
    %c0_i32_12 = arith.constant 0 : i32
    %48 = arith.sitofp %c0_i32_12 : i32 to f32
    %49 = vector.broadcast %48 : f32 to vector<8x256xf32>
    %50 = arith.select %47, %45, %49 : vector<8x256xi1>, vector<8x256xf32>
    %51 = vector.extract_strided_slice %1 {offsets = [0, 19], sizes = [8, 256], strides = [1, 1]} : vector<8x322xf32> to vector<8x256xf32>
    %c13_i32_13 = arith.constant 13 : i32
    %52 = vector.broadcast %c13_i32_13 : i32 to vector<8x256xi32>
    %53 = arith.cmpi sle, %18, %52 : vector<8x256xi32>
    %c0_i32_14 = arith.constant 0 : i32
    %54 = arith.sitofp %c0_i32_14 : i32 to f32
    %55 = vector.broadcast %54 : f32 to vector<8x256xf32>
    %56 = arith.select %53, %51, %55 : vector<8x256xi1>, vector<8x256xf32>
    %57 = vector.extract_strided_slice %1 {offsets = [0, 32], sizes = [8, 256], strides = [1, 1]} : vector<8x322xf32> to vector<8x256xf32>
    %c1_i32_15 = arith.constant 1 : i32
    %58 = vector.broadcast %c1_i32_15 : i32 to vector<8x256xi32>
    %59 = arith.cmpi sge, %18, %58 : vector<8x256xi32>
    %c0_i32_16 = arith.constant 0 : i32
    %60 = arith.sitofp %c0_i32_16 : i32 to f32
    %61 = vector.broadcast %60 : f32 to vector<8x256xf32>
    %62 = arith.select %59, %57, %61 : vector<8x256xi1>, vector<8x256xf32>
    %63 = vector.extract_strided_slice %1 {offsets = [0, 33], sizes = [8, 256], strides = [1, 1]} : vector<8x322xf32> to vector<8x256xf32>
    %64 = vector.extract_strided_slice %1 {offsets = [0, 34], sizes = [8, 256], strides = [1, 1]} : vector<8x322xf32> to vector<8x256xf32>
    %c14_i32_17 = arith.constant 14 : i32
    %65 = vector.broadcast %c14_i32_17 : i32 to vector<8x256xi32>
    %66 = arith.cmpi sle, %18, %65 : vector<8x256xi32>
    %c0_i32_18 = arith.constant 0 : i32
    %67 = arith.sitofp %c0_i32_18 : i32 to f32
    %68 = vector.broadcast %67 : f32 to vector<8x256xf32>
    %69 = arith.select %66, %64, %68 : vector<8x256xi1>, vector<8x256xf32>
    %70 = vector.extract_strided_slice %1 {offsets = [0, 35], sizes = [8, 256], strides = [1, 1]} : vector<8x322xf32> to vector<8x256xf32>
    %c13_i32_19 = arith.constant 13 : i32
    %71 = vector.broadcast %c13_i32_19 : i32 to vector<8x256xi32>
    %72 = arith.cmpi sle, %18, %71 : vector<8x256xi32>
    %c0_i32_20 = arith.constant 0 : i32
    %73 = arith.sitofp %c0_i32_20 : i32 to f32
    %74 = vector.broadcast %73 : f32 to vector<8x256xf32>
    %75 = arith.select %72, %70, %74 : vector<8x256xi1>, vector<8x256xf32>
    %76 = vector.extract_strided_slice %1 {offsets = [0, 48], sizes = [8, 256], strides = [1, 1]} : vector<8x322xf32> to vector<8x256xf32>
    %c1_i32_21 = arith.constant 1 : i32
    %77 = vector.broadcast %c1_i32_21 : i32 to vector<8x256xi32>
    %78 = arith.cmpi sge, %18, %77 : vector<8x256xi32>
    %c0_i32_22 = arith.constant 0 : i32
    %79 = arith.sitofp %c0_i32_22 : i32 to f32
    %80 = vector.broadcast %79 : f32 to vector<8x256xf32>
    %81 = arith.select %78, %76, %80 : vector<8x256xi1>, vector<8x256xf32>
    %82 = vector.extract_strided_slice %1 {offsets = [0, 49], sizes = [8, 256], strides = [1, 1]} : vector<8x322xf32> to vector<8x256xf32>
    %83 = vector.extract_strided_slice %1 {offsets = [0, 50], sizes = [8, 256], strides = [1, 1]} : vector<8x322xf32> to vector<8x256xf32>
    %c14_i32_23 = arith.constant 14 : i32
    %84 = vector.broadcast %c14_i32_23 : i32 to vector<8x256xi32>
    %85 = arith.cmpi sle, %18, %84 : vector<8x256xi32>
    %c0_i32_24 = arith.constant 0 : i32
    %86 = arith.sitofp %c0_i32_24 : i32 to f32
    %87 = vector.broadcast %86 : f32 to vector<8x256xf32>
    %88 = arith.select %85, %83, %87 : vector<8x256xi1>, vector<8x256xf32>
    %89 = vector.extract_strided_slice %1 {offsets = [0, 51], sizes = [8, 256], strides = [1, 1]} : vector<8x322xf32> to vector<8x256xf32>
    %c13_i32_25 = arith.constant 13 : i32
    %90 = vector.broadcast %c13_i32_25 : i32 to vector<8x256xi32>
    %91 = arith.cmpi sle, %18, %90 : vector<8x256xi32>
    %c0_i32_26 = arith.constant 0 : i32
    %92 = arith.sitofp %c0_i32_26 : i32 to f32
    %93 = vector.broadcast %92 : f32 to vector<8x256xf32>
    %94 = arith.select %91, %89, %93 : vector<8x256xi1>, vector<8x256xf32>
    %95 = tpu.concatenate %24, %25, %31, %37, %43, %44, %50, %56, %62, %63, %69, %75, %81, %82, %88, %94 in 0 : vector<8x256xf32>, vector<8x256xf32>, vector<8x256xf32>, vector<8x256xf32>, vector<8x256xf32>, vector<8x256xf32>, vector<8x256xf32>, vector<8x256xf32>, vector<8x256xf32>, vector<8x256xf32>, vector<8x256xf32>, vector<8x256xf32>, vector<8x256xf32>, vector<8x256xf32>, vector<8x256xf32>, vector<8x256xf32> -> vector<128x256xf32>
    %c0_27 = arith.constant 0 : index
    %c0_28 = arith.constant 0 : index
    %c0_29 = arith.constant 0 : index
    %96 = vector.load %arg2[%c0_27, %c0_28, %c0_29] : memref<1x8x82xf32, #tpu.memory_space<vmem>>, vector<1x8x82xf32>
    %97 = vector.shape_cast %96 : vector<1x8x82xf32> to vector<8x82xf32>
    %98 = tpu.iota {dimensions = array<i32: 1>} : vector<8x64xi32>
    %c8_i32 = arith.constant 8 : i32
    %c0_i32_30 = arith.constant 0 : i32
    %99 = arith.cmpi eq, %c8_i32, %c0_i32_30 : i32
    %c1_i32_31 = arith.constant 1 : i32
    %100 = arith.select %99, %c1_i32_31, %c8_i32 : i32
    %101 = vector.broadcast %100 : i32 to vector<8x64xi32>
    %102 = arith.remsi %98, %101 : vector<8x64xi32>
    %c0_i32_32 = arith.constant 0 : i32
    %103 = vector.broadcast %c0_i32_32 : i32 to vector<8x64xi32>
    %104 = arith.cmpi ne, %102, %103 : vector<8x64xi32>
    %c0_i32_33 = arith.constant 0 : i32
    %105 = vector.broadcast %c0_i32_33 : i32 to vector<8x64xi32>
    %106 = arith.cmpi slt, %102, %105 : vector<8x64xi32>
    %c0_i32_34 = arith.constant 0 : i32
    %107 = arith.cmpi slt, %100, %c0_i32_34 : i32
    %108 = vector.broadcast %107 : i1 to vector<8x64xi1>
    %109 = vector.broadcast %108 : vector<8x64xi1> to vector<8x64xi1>
    %110 = arith.xori %106, %109 : vector<8x64xi1>
    %111 = arith.andi %110, %104 : vector<8x64xi1>
    %112 = vector.broadcast %100 : i32 to vector<8x64xi32>
    %113 = arith.addi %102, %112 : vector<8x64xi32>
    %114 = arith.select %111, %113, %102 : vector<8x64xi1>, vector<8x64xi32>
    %115 = vector.extract_strided_slice %97 {offsets = [0, 0], sizes = [8, 64], strides = [1, 1]} : vector<8x82xf32> to vector<8x64xf32>
    %c1_i32_35 = arith.constant 1 : i32
    %116 = vector.broadcast %c1_i32_35 : i32 to vector<8x64xi32>
    %117 = arith.cmpi sge, %114, %116 : vector<8x64xi32>
    %c0_i32_36 = arith.constant 0 : i32
    %118 = arith.sitofp %c0_i32_36 : i32 to f32
    %119 = vector.broadcast %118 : f32 to vector<8x64xf32>
    %120 = arith.select %117, %115, %119 : vector<8x64xi1>, vector<8x64xf32>
    %121 = vector.extract_strided_slice %97 {offsets = [0, 1], sizes = [8, 64], strides = [1, 1]} : vector<8x82xf32> to vector<8x64xf32>
    %122 = vector.extract_strided_slice %97 {offsets = [0, 2], sizes = [8, 64], strides = [1, 1]} : vector<8x82xf32> to vector<8x64xf32>
    %c6_i32 = arith.constant 6 : i32
    %123 = vector.broadcast %c6_i32 : i32 to vector<8x64xi32>
    %124 = arith.cmpi sle, %114, %123 : vector<8x64xi32>
    %c0_i32_37 = arith.constant 0 : i32
    %125 = arith.sitofp %c0_i32_37 : i32 to f32
    %126 = vector.broadcast %125 : f32 to vector<8x64xf32>
    %127 = arith.select %124, %122, %126 : vector<8x64xi1>, vector<8x64xf32>
    %128 = vector.extract_strided_slice %97 {offsets = [0, 8], sizes = [8, 64], strides = [1, 1]} : vector<8x82xf32> to vector<8x64xf32>
    %c1_i32_38 = arith.constant 1 : i32
    %129 = vector.broadcast %c1_i32_38 : i32 to vector<8x64xi32>
    %130 = arith.cmpi sge, %114, %129 : vector<8x64xi32>
    %c0_i32_39 = arith.constant 0 : i32
    %131 = arith.sitofp %c0_i32_39 : i32 to f32
    %132 = vector.broadcast %131 : f32 to vector<8x64xf32>
    %133 = arith.select %130, %128, %132 : vector<8x64xi1>, vector<8x64xf32>
    %134 = vector.extract_strided_slice %97 {offsets = [0, 9], sizes = [8, 64], strides = [1, 1]} : vector<8x82xf32> to vector<8x64xf32>
    %135 = vector.extract_strided_slice %97 {offsets = [0, 10], sizes = [8, 64], strides = [1, 1]} : vector<8x82xf32> to vector<8x64xf32>
    %c6_i32_40 = arith.constant 6 : i32
    %136 = vector.broadcast %c6_i32_40 : i32 to vector<8x64xi32>
    %137 = arith.cmpi sle, %114, %136 : vector<8x64xi32>
    %c0_i32_41 = arith.constant 0 : i32
    %138 = arith.sitofp %c0_i32_41 : i32 to f32
    %139 = vector.broadcast %138 : f32 to vector<8x64xf32>
    %140 = arith.select %137, %135, %139 : vector<8x64xi1>, vector<8x64xf32>
    %141 = vector.extract_strided_slice %97 {offsets = [0, 16], sizes = [8, 64], strides = [1, 1]} : vector<8x82xf32> to vector<8x64xf32>
    %c1_i32_42 = arith.constant 1 : i32
    %142 = vector.broadcast %c1_i32_42 : i32 to vector<8x64xi32>
    %143 = arith.cmpi sge, %114, %142 : vector<8x64xi32>
    %c0_i32_43 = arith.constant 0 : i32
    %144 = arith.sitofp %c0_i32_43 : i32 to f32
    %145 = vector.broadcast %144 : f32 to vector<8x64xf32>
    %146 = arith.select %143, %141, %145 : vector<8x64xi1>, vector<8x64xf32>
    %147 = vector.extract_strided_slice %97 {offsets = [0, 17], sizes = [8, 64], strides = [1, 1]} : vector<8x82xf32> to vector<8x64xf32>
    %148 = vector.extract_strided_slice %97 {offsets = [0, 18], sizes = [8, 64], strides = [1, 1]} : vector<8x82xf32> to vector<8x64xf32>
    %c6_i32_44 = arith.constant 6 : i32
    %149 = vector.broadcast %c6_i32_44 : i32 to vector<8x64xi32>
    %150 = arith.cmpi sle, %114, %149 : vector<8x64xi32>
    %c0_i32_45 = arith.constant 0 : i32
    %151 = arith.sitofp %c0_i32_45 : i32 to f32
    %152 = vector.broadcast %151 : f32 to vector<8x64xf32>
    %153 = arith.select %150, %148, %152 : vector<8x64xi1>, vector<8x64xf32>
    %154 = tpu.concatenate %120, %121, %127, %133, %134, %140, %146, %147, %153 in 0 : vector<8x64xf32>, vector<8x64xf32>, vector<8x64xf32>, vector<8x64xf32>, vector<8x64xf32>, vector<8x64xf32>, vector<8x64xf32>, vector<8x64xf32>, vector<8x64xf32> -> vector<72x64xf32>
    %c0_46 = arith.constant 0 : index
    %c0_47 = arith.constant 0 : index
    %155 = vector.load %arg3[%c0_46, %c0_47] : memref<4x128xf32, #tpu.memory_space<vmem>>, vector<4x128xf32>
    %cst = arith.constant dense<0.000000e+00> : vector<4x256xf32>
    %156 = tpu.matmul %155, %95, %cst {dimension_numbers = #tpu.dot_dimension_numbers<[1], [0], [0], [1], [0, 0, 1, 1], [], []>} : vector<4x128xf32>, vector<128x256xf32>, vector<4x256xf32> -> vector<4x256xf32>
    %c0_48 = arith.constant 0 : index
    %c0_49 = arith.constant 0 : index
    %157 = vector.load %arg7[%c0_48, %c0_49] : memref<4x1xf32, #tpu.memory_space<vmem>>, vector<4x1xf32>
    %158 = vector.broadcast %157 : vector<4x1xf32> to vector<4x256xf32>
    %159 = arith.addf %156, %158 : vector<4x256xf32>
    %c0_50 = arith.constant 0 : index
    %c0_51 = arith.constant 0 : index
    %c0_52 = arith.constant 0 : index
    %160 = vector.load %arg11[%c0_50, %c0_51, %c0_52] : memref<1x4x256xf32, #tpu.memory_space<vmem>>, vector<1x4x256xf32>
    %161 = vector.shape_cast %160 : vector<1x4x256xf32> to vector<4x256xf32>
    %162 = vector.shape_cast %159 : vector<4x256xf32> to vector<1x4x256xf32>
    tpu.vector_store %arg11[%c0_50, %c0_51, %c0_52], %162 {strides = array<i32>} : memref<1x4x256xf32, #tpu.memory_space<vmem>>, vector<1x4x256xf32>,
    %c0_53 = arith.constant 0 : index
    %c0_54 = arith.constant 0 : index
    %163 = vector.load %arg4[%c0_53, %c0_54] : memref<4x128xf32, #tpu.memory_space<vmem>>, vector<4x128xf32>
    %cst_55 = arith.constant dense<0.000000e+00> : vector<4x256xf32>
    %164 = tpu.matmul %163, %95, %cst_55 {dimension_numbers = #tpu.dot_dimension_numbers<[1], [0], [0], [1], [0, 0, 1, 1], [], []>} : vector<4x128xf32>, vector<128x256xf32>, vector<4x256xf32> -> vector<4x256xf32>
    %c0_56 = arith.constant 0 : index
    %c0_57 = arith.constant 0 : index
    %165 = vector.load %arg8[%c0_56, %c0_57] : memref<4x1xf32, #tpu.memory_space<vmem>>, vector<4x1xf32>
    %166 = vector.broadcast %165 : vector<4x1xf32> to vector<4x256xf32>
    %167 = arith.addf %164, %166 : vector<4x256xf32>
    %c0_58 = arith.constant 0 : index
    %c0_59 = arith.constant 0 : index
    %c0_60 = arith.constant 0 : index
    %168 = vector.load %arg12[%c0_58, %c0_59, %c0_60] : memref<1x4x256xf32, #tpu.memory_space<vmem>>, vector<1x4x256xf32>
    %169 = vector.shape_cast %168 : vector<1x4x256xf32> to vector<4x256xf32>
    %170 = vector.shape_cast %167 : vector<4x256xf32> to vector<1x4x256xf32>
    tpu.vector_store %arg12[%c0_58, %c0_59, %c0_60], %170 {strides = array<i32>} : memref<1x4x256xf32, #tpu.memory_space<vmem>>, vector<1x4x256xf32>,
    %c0_61 = arith.constant 0 : index
    %c0_62 = arith.constant 0 : index
    %171 = vector.load %arg5[%c0_61, %c0_62] : memref<4x72xf32, #tpu.memory_space<vmem>>, vector<4x72xf32>
    %cst_63 = arith.constant dense<0.000000e+00> : vector<4x64xf32>
    %172 = tpu.matmul %171, %154, %cst_63 {dimension_numbers = #tpu.dot_dimension_numbers<[1], [0], [0], [1], [0, 0, 1, 1], [], []>} : vector<4x72xf32>, vector<72x64xf32>, vector<4x64xf32> -> vector<4x64xf32>
    %c0_64 = arith.constant 0 : index
    %c0_65 = arith.constant 0 : index
    %173 = vector.load %arg9[%c0_64, %c0_65] : memref<4x1xf32, #tpu.memory_space<vmem>>, vector<4x1xf32>
    %174 = vector.broadcast %173 : vector<4x1xf32> to vector<4x64xf32>
    %175 = arith.addf %172, %174 : vector<4x64xf32>
    %c0_66 = arith.constant 0 : index
    %c0_67 = arith.constant 0 : index
    %c0_68 = arith.constant 0 : index
    %176 = vector.load %arg13[%c0_66, %c0_67, %c0_68] : memref<1x4x64xf32, #tpu.memory_space<vmem>>, vector<1x4x64xf32>
    %177 = vector.shape_cast %176 : vector<1x4x64xf32> to vector<4x64xf32>
    %178 = vector.shape_cast %175 : vector<4x64xf32> to vector<1x4x64xf32>
    tpu.vector_store %arg13[%c0_66, %c0_67, %c0_68], %178 {strides = array<i32>} : memref<1x4x64xf32, #tpu.memory_space<vmem>>, vector<1x4x64xf32>,
    %c0_69 = arith.constant 0 : index
    %c0_70 = arith.constant 0 : index
    %179 = vector.load %arg6[%c0_69, %c0_70] : memref<4x72xf32, #tpu.memory_space<vmem>>, vector<4x72xf32>
    %cst_71 = arith.constant dense<0.000000e+00> : vector<4x64xf32>
    %180 = tpu.matmul %179, %154, %cst_71 {dimension_numbers = #tpu.dot_dimension_numbers<[1], [0], [0], [1], [0, 0, 1, 1], [], []>} : vector<4x72xf32>, vector<72x64xf32>, vector<4x64xf32> -> vector<4x64xf32>
    %c0_72 = arith.constant 0 : index
    %c0_73 = arith.constant 0 : index
    %181 = vector.load %arg10[%c0_72, %c0_73] : memref<4x1xf32, #tpu.memory_space<vmem>>, vector<4x1xf32>
    %182 = vector.broadcast %181 : vector<4x1xf32> to vector<4x64xf32>
    %183 = arith.addf %180, %182 : vector<4x64xf32>
    %c0_74 = arith.constant 0 : index
    %c0_75 = arith.constant 0 : index
    %c0_76 = arith.constant 0 : index
    %184 = vector.load %arg14[%c0_74, %c0_75, %c0_76] : memref<1x4x64xf32, #tpu.memory_space<vmem>>, vector<1x4x64xf32>
    %185 = vector.shape_cast %184 : vector<1x4x64xf32> to vector<4x64xf32>
    %186 = vector.shape_cast %183 : vector<4x64xf32> to vector<1x4x64xf32>
    tpu.vector_store %arg14[%c0_74, %c0_75, %c0_76], %186 {strides = array<i32>} : memref<1x4x64xf32, #tpu.memory_space<vmem>>, vector<1x4x64xf32>,
    return
  }
  func.func @transform_0(%arg0: i32) -> (i32, i32, i32) {
    %c0_i32 = arith.constant 0 : i32
    %c0_i32_0 = arith.constant 0 : i32
    %c0_i32_1 = arith.constant 0 : i32
    return %arg0, %c0_i32, %c0_i32_0 : i32, i32, i32
  }
  func.func @transform_1(%arg0: i32) -> (i32, i32, i32) {
    %c0_i32 = arith.constant 0 : i32
    %c0_i32_0 = arith.constant 0 : i32
    %c0_i32_1 = arith.constant 0 : i32
    return %arg0, %c0_i32, %c0_i32_0 : i32, i32, i32
  }
  func.func @transform_2(%arg0: i32) -> (i32, i32) {
    %c0_i32 = arith.constant 0 : i32
    %c0_i32_0 = arith.constant 0 : i32
    %c0_i32_1 = arith.constant 0 : i32
    return %c0_i32, %c0_i32_0 : i32, i32
  }
  func.func @transform_3(%arg0: i32) -> (i32, i32) {
    %c0_i32 = arith.constant 0 : i32
    %c0_i32_0 = arith.constant 0 : i32
    %c0_i32_1 = arith.constant 0 : i32
    return %c0_i32, %c0_i32_0 : i32, i32
  }
  func.func @transform_4(%arg0: i32) -> (i32, i32) {
    %c0_i32 = arith.constant 0 : i32
    %c0_i32_0 = arith.constant 0 : i32
    %c0_i32_1 = arith.constant 0 : i32
    return %c0_i32, %c0_i32_0 : i32, i32
  }
  func.func @transform_5(%arg0: i32) -> (i32, i32) {
    %c0_i32 = arith.constant 0 : i32
    %c0_i32_0 = arith.constant 0 : i32
    %c0_i32_1 = arith.constant 0 : i32
    return %c0_i32, %c0_i32_0 : i32, i32
  }
  func.func @transform_6(%arg0: i32) -> (i32, i32) {
    %c0_i32 = arith.constant 0 : i32
    %c0_i32_0 = arith.constant 0 : i32
    %c0_i32_1 = arith.constant 0 : i32
    return %c0_i32, %c0_i32_0 : i32, i32
  }
  func.func @transform_7(%arg0: i32) -> (i32, i32) {
    %c0_i32 = arith.constant 0 : i32
    %c0_i32_0 = arith.constant 0 : i32
    %c0_i32_1 = arith.constant 0 : i32
    return %c0_i32, %c0_i32_0 : i32, i32
  }
  func.func @transform_8(%arg0: i32) -> (i32, i32) {
    %c0_i32 = arith.constant 0 : i32
    %c0_i32_0 = arith.constant 0 : i32
    %c0_i32_1 = arith.constant 0 : i32
    return %c0_i32, %c0_i32_0 : i32, i32
  }
  func.func @transform_9(%arg0: i32) -> (i32, i32) {
    %c0_i32 = arith.constant 0 : i32
    %c0_i32_0 = arith.constant 0 : i32
    %c0_i32_1 = arith.constant 0 : i32
    return %c0_i32, %c0_i32_0 : i32, i32
  }
  func.func @transform_10(%arg0: i32) -> (i32, i32, i32) {
    %c0_i32 = arith.constant 0 : i32
    %c0_i32_0 = arith.constant 0 : i32
    %c0_i32_1 = arith.constant 0 : i32
    return %arg0, %c0_i32, %c0_i32_0 : i32, i32, i32
  }
  func.func @transform_11(%arg0: i32) -> (i32, i32, i32) {
    %c0_i32 = arith.constant 0 : i32
    %c0_i32_0 = arith.constant 0 : i32
    %c0_i32_1 = arith.constant 0 : i32
    return %arg0, %c0_i32, %c0_i32_0 : i32, i32, i32
  }
  func.func @transform_12(%arg0: i32) -> (i32, i32, i32) {
    %c0_i32 = arith.constant 0 : i32
    %c0_i32_0 = arith.constant 0 : i32
    %c0_i32_1 = arith.constant 0 : i32
    return %arg0, %c0_i32, %c0_i32_0 : i32, i32, i32
  }
  func.func @transform_13(%arg0: i32) -> (i32, i32, i32) {
    %c0_i32 = arith.constant 0 : i32
    %c0_i32_0 = arith.constant 0 : i32
    %c0_i32_1 = arith.constant 0 : i32
    return %arg0, %c0_i32, %c0_i32_0 : i32, i32, i32
  }
}

</mosaic_0001>

<bundles_post_ra>
// kernel: oct_conv_pallas.1
= control target key start
LH: loop header
LB: loop body
LE: loop exit
PB: predicated region body
PF: predicated region fallthrough
CT: control target
= control target key end

     0   :  { %s1736_s25 = smov 0   ;;  %s1981_s0 = inlined_call_operand.vmem [shape: f32[2,8,322], index: 0, kind: input, shape index: {}]   ;;  %s1982_s1 = inlined_call_operand.vmem [shape: f32[2,8,82], index: 1, kind: input, shape index: {}]   ;;  %s1983_s2 = inlined_call_operand.vmem [shape: f32[4,128], index: 2, kind: input, shape index: {}]   ;;  %s1984_s3 = inlined_call_operand.vmem [shape: f32[4,128], index: 3, kind: input, shape index: {}]   ;;  %s1985_s4 = inlined_call_operand.vmem [shape: f32[4,72], index: 4, kind: input, shape index: {}]   ;;  %s1986_s5 = inlined_call_operand.vmem [shape: f32[4,72], index: 5, kind: input, shape index: {}]   ;;  %s1987_s6 = inlined_call_operand.vmem [shape: f32[4,1], index: 6, kind: input, shape index: {}]   ;;  %s1988_s7 = inlined_call_operand.vmem [shape: f32[4,1], index: 7, kind: input, shape index: {}]   ;;  %s1989_s8 = inlined_call_operand.vmem [shape: f32[4,1], index: 8, kind: input, shape index: {}]   ;;  %s1990_s9 = inlined_call_operand.vmem [shape: f32[4,1], index: 9, kind: input, shape index: {}]   ;;  %s1991_s10 = inlined_call_operand.vmem [shape: f32[2,4,256], index: 10, kind: output, shape index: {0}]   ;;  %s1992_s11 = inlined_call_operand.vmem [shape: f32[2,4,256], index: 11, kind: output, shape index: {1}]   ;;  %s1993_s12 = inlined_call_operand.vmem [shape: f32[2,4,64], index: 12, kind: output, shape index: {2}]   ;;  %s1994_s13 = inlined_call_operand.vmem [shape: f32[2,4,64], index: 13, kind: output, shape index: {3}]  }
   0x1 LB: > { %s1257_s26 = sadd.s32 4294967295, %s1641_s25   ;;  %p1261_p0 = scmp.ge.s32.totalorder %s1641_s25, 1  ;;  %s1641_s25 = sphi %s1736_s25, %s24_s25  }
   0x2   : > { %p403_p1 = scmp.lt.s32.totalorder %s1641_s25, 3 }
   0x4   : > { %p404_p2 = pnand %p1261_p0, %p403_p1 }
   0x5   : > { %p464_p3 = scmp.lt.s32.totalorder (!%p404_p2), %s1257_s26, 1  ;;  %s1643_s14 = smov (!%p404_p2), 126   ;;  %v1656_v4 = vmov (!%p404_p2), 0.0   ;;  %v1662_v6 = vmov (!%p404_p2), 0   ;;  %v849_v7 = vld [vmem:[%s1988_s7] sm:$0xf] (!%p404_p2)  ;;  %v494_v11 = vlaneseq (!%p404_p2) }
   0x6   : > { %407 = sbr.rel (%p404_p2) target bundleno = 430 (0x1ae), region = 60  ;;  %s1644_s15 = smov (!%p404_p2), 127   ;;  %836 = vmatprep.mubr.f32.mxu0 (!%p404_p2), %v1656_v4  ;;  %919 = vmatprep.mubr.f32.mxu1 (!%p404_p2), %v1656_v4  ;;  %v766_v8 = vld [vmem:[%s1987_s6] sm:$0xf] (!%p404_p2)  ;;  %vm681_vm0 = vcmask (!%p404_p2), 1039360   ;;  %vm1663_vm3 = vmmov (!%p404_p2), 1  }
   0x7   : > { %s1645_s16 = smov (!%p404_p2), 125   ;;  %s1646_s17 = smov (!%p404_p2), 111   ;;  %1634 = vset.pattern.permute.xlu1 (!%p404_p2), %v1662_v6  ;;  %1633 = vset.pattern.permute.xlu0 (!%p404_p2), %v1662_v6  ;;  %v932_v9 = vld [vmem:[%s1989_s8] sm:$0xf] (!%p404_p2)  ;;  %v1816_v12 = vand.u32 (!%p404_p2), 127, %v494_v11  ;;  %vm536_vm5 = vcmask (!%p404_p2), 1031168  }
   0x8   : > { %s1647_s18 = smov (!%p404_p2), 112   ;;  %s1648_s19 = smov (!%p404_p2), 109   ;;  %v1015_v10 = vld [vmem:[%s1990_s9] sm:$0xf] (!%p404_p2)  ;;  %vm551_vm6 = vcmask (!%p404_p2), 1022976   ;;  %vm692_vm14 = vcmask (!%p404_p2), 908288  }
   0x9   : > { %s1649_s20 = smov (!%p404_p2), 110   ;;  %s1650_s21 = smov (!%p404_p2), 95   ;;  %v496_v13 = vadd.s32 (!%p404_p2), 128, %v1816_v12  ;;  %v501_v15 = vand.u32 (!%p404_p2), 15, %v1816_v12  ;;  %vm564_vm15 = vcmask (!%p404_p2), 916480  }
   0xa   : > { %s1651_s22 = smov (!%p404_p2), 96   ;;  %s1652_s23 = smov (!%p404_p2), 93   ;;  %v848_v34 = vld [vmem:[%s1984_s3] sm:$0xf] (!%p404_p2) }
   0xb   : > { %s1653_s24 = smov (!%p404_p2), 94   ;;  %s1655_s28 = smov (!%p404_p2), 80   ;;  %v508_v14 = vand.u32 (!%p404_p2), 15, %v496_v13  ;;  %vm521_vm2 = vcmp.ge.s32.totalorder (!%p404_p2), %v501_v15, 1  ;;  %vm525_vm10 = vcmp.le.s32.totalorder (!%p404_p2), %v501_v15, 14  ;;  %vm543_vm11 = vcmp.le.s32.totalorder (!%p404_p2), %v501_v15, 13 }
   0xc   : > { %vm1830_vm9 = vmpackc.low (!%p404_p2), %vm1663_vm3, %vm521_vm2  ;;  %vm703_vm2 = vcmask (!%p404_p2), 777216  }
   0xd   : > { %s2010_s26 = smov (!%p464_p3, %s1257_s26), 1  ;;  %vm522_vm1 = vcmp.ge.s32.totalorder %v508_v14, 1  ;;  %vm526_vm7 = vcmp.le.s32.totalorder %v508_v14, 14  ;;  %vm544_vm8 = vcmp.le.s32.totalorder %v508_v14, 13  ;;  %vm1851_vm13 = vmpackc.low %vm543_vm11, %vm525_vm10  ;;  %vm642_vm10 = vcmask 654336  }
   0xe   : > { %s1526_s27 = smul.u32 24, %s2010_s26  ;;  %s1781_s29 = sshll.u32 %s2010_s26, 3  ;;  %vm1822_vm4 = vmpackc.low %vm1663_vm3, %vm522_vm1  ;;  %vm577_vm1 = vcmask 900096   ;;  %vm668_vm11 = vcmask 629760  }
   0xf   : > { %vm1841_vm12 = vmpackc.low %vm544_vm8, %vm526_vm7  ;;  %vm616_vm7 = vcmask 769024   ;;  %vm714_vm8 = vcmask 646144  }
  0x10   : > { %s468_s30 = scalar_lea.vmem %s1981_s0, %s1526_s27  ;;  %s1654_s27 = smov 79  }
  0x11   : > { %v1750_v0 = vld [vmem:[%s468_s30 + $0x8] sm:$0xff]  ;;  %v493_v1 = vld [vmem:[%s468_s30 + $0x10] sm:$0xff]  ;;  %v1755_v3 = vld [vmem:[%s468_s30] sm:$0xff]  ;;  %s1657_s30 = smov 77  }
  0x12   : > { %v1563_v2 = vpack.i.bf16 %v493_v1, %v1750_v0 }
  0x14   : > { %1564 = vrot.lane.b32.xlu1 %v1563_v2, %s1643_s14  ;;  %1559 = vrot.lane.b32.xlu0 %v1563_v2, %s1644_s15 }
  0x18   : > { %1569 = vrot.lane.b32.xlu1 %v1563_v2, %s1645_s16  ;;  %675 = vrot.lane.b32.xlu0 %v1755_v3, %s1644_s15 }
  0x1c   : > { %545 = vrot.lane.b32.xlu1 %v1755_v3, %s1645_s16  ;;  %530 = vrot.lane.b32.xlu0 %v1755_v3, %s1643_s14  ;;  %s1658_s16 = smov 78  }
  0x20   : > { %1579 = vrot.lane.b32.xlu1 %v1563_v2, %s1646_s17  ;;  %1574 = vrot.lane.b32.xlu0 %v1563_v2, %s1647_s18 }
  0x24   : > { %686 = vrot.lane.b32.xlu1 %v1755_v3, %s1646_s17  ;;  %558 = vrot.lane.b32.xlu0 %v1755_v3, %s1647_s18 }
  0x28   : > { %1589 = vrot.lane.b32.xlu1 %v1563_v2, %s1648_s19  ;;  %1584 = vrot.lane.b32.xlu0 %v1563_v2, %s1649_s20 }
  0x2c   : > { %584 = vrot.lane.b32.xlu1 %v1755_v3, %s1648_s19  ;;  %571 = vrot.lane.b32.xlu0 %v1755_v3, %s1649_s20 }
  0x30   : > { %1599 = vrot.lane.b32.xlu1 %v1563_v2, %s1650_s21  ;;  %1594 = vrot.lane.b32.xlu0 %v1563_v2, %s1651_s22 }
  0x34   : > { %697 = vrot.lane.b32.xlu1 %v1755_v3, %s1650_s21  ;;  %597 = vrot.lane.b32.xlu0 %v1755_v3, %s1651_s22  ;;  %s472_s22 = scalar_lea.vmem %s1982_s1, %s1781_s29  ;;  %s482_s21 = scalar_lea.vmem %s1992_s11, %s1781_s29 }
  0x35   : > { %v1789_v5 = vld [vmem:[%s472_s22] sm:$0xff] }
  0x38   : > { %1609 = vrot.lane.b32.xlu1 %v1563_v2, %s1652_s23  ;;  %1604 = vrot.lane.b32.xlu0 %v1563_v2, %s1653_s24 }
  0x3c   : > { %623 = vrot.lane.b32.xlu1 %v1755_v3, %s1652_s23  ;;  %610 = vrot.lane.b32.xlu0 %v1755_v3, %s1653_s24  ;;  %s1659_s23 = smov 120   ;;  %s1660_s24 = smov 118  }
  0x40   : > { %1619 = vrot.lane.b32.xlu1 %v1563_v2, %s1654_s27  ;;  %1614 = vrot.lane.b32.xlu0 %v1563_v2, %s1655_s28 }
  0x44   : > { %708 = vrot.lane.b32.xlu1 %v1755_v3, %s1654_s27  ;;  %636 = vrot.lane.b32.xlu0 %v1755_v3, %s1655_s28  ;;  %s1661_s27 = smov 119  }
  0x48   : > { %1629 = vrot.lane.b32.xlu1 %v1563_v2, %s1657_s30  ;;  %1624 = vrot.lane.b32.xlu0 %v1563_v2, %s1658_s16 }
  0x4c   : > { %662 = vrot.lane.b32.xlu1 %v1755_v3, %s1657_s30  ;;  %649 = vrot.lane.b32.xlu0 %v1755_v3, %s1658_s16 }
  0x50   : > { %756 = vrot.lane.b32.xlu0 %v1789_v5, %s1644_s15  ;;  %736 = vrot.lane.b32.xlu1 %v1789_v5, %s1643_s14 }
  0x54   : > { %740 = vrot.lane.b32.xlu0 %v1789_v5, %s1659_s23  ;;  %744 = vrot.lane.b32.xlu1 %v1789_v5, %s1660_s24 }
  0x58   : > { %759 = vrot.lane.b32.xlu0 %v1789_v5, %s1661_s27  ;;  %748 = vrot.lane.b32.xlu1 %v1789_v5, %s1647_s18  ;;  %s477_s18 = scalar_lea.vmem %s1991_s10, %s1781_s29 }
  0x5c   : > { %762 = vrot.lane.b32.xlu0 %v1789_v5, %s1646_s17  ;;  %752 = vrot.lane.b32.xlu1 %v1789_v5, %s1649_s20  ;;  %s1268_s17 = sshll.u32 %s2010_s26, 2 }
  0x5d   : > { %s486_s23 = scalar_lea.vmem %s1993_s12, %s1268_s17  ;;  %s490_s14 = scalar_lea.vmem %s1994_s13, %s1268_s17 }
  0x60   : > { %852 = vperm.xlu1 %1634, %v849_v7   ;;  %769 = vperm.xlu0 %1633, %v766_v8  }
  0x64   : > { %935 = vperm.xlu1 %1634, %v932_v9   ;;  %1018 = vperm.xlu0 %1633, %v1015_v10  }
  0x86   : > { %v1565_v16 = vpop.permute.xlu1 %1564  ;;  %v1560_v17 = vpop.permute.xlu0 %1559 }
  0x87   : > { %v1562_v18 = vunpack.i.h.bf16 %v1560_v17  ;;  %v1561_v19 = vunpack.i.l.bf16 %v1560_v17  ;;  %v1567_v20 = vunpack.i.h.bf16 %v1565_v16  ;;  %v1566_v21 = vunpack.i.l.bf16 %v1565_v16 }
  0x89   : > { %v683_v22 = vsel %vm681_vm0, %v1561_v19, %v1562_v18  ;;  %v538_v33 = vsel %vm536_vm5, %v1566_v21, %v1567_v20 }
  0x8a   : > { %v1570_v24 = vpop.permute.xlu1 %1569  ;;  %v676_v25 = vpop.permute.xlu0 %675  ;;  %v1398_v26 = vpack.c.bf16 %v683_v22, %v1750_v0 }
  0x8b   : > { %v1572_v27 = vunpack.i.h.bf16 %v1570_v24  ;;  %v1571_v28 = vunpack.i.l.bf16 %v1570_v24  ;;  %v682_v29 = vsel %vm681_vm0, %v676_v25, %v1561_v19  ;;  %vm590_vm0 = vcmask 891904  }
  0x8c   : > { %v1401_v31 = vpack.c.bf16 %v682_v29, %v1755_v3  ;;  %1400 = vmatprep.subr.msk.bf16.mxu0 %vm1822_vm4, %v1398_v26  ;;  %1448 = vmatprep.subr.msk.bf16.mxu1 %vm1822_vm4, %v1398_v26 }
  0x8d   : > { %v553_v32 = vsel %vm551_vm6, %v1571_v28, %v1572_v27 }
  0x8e   : > { %v546_v35 = vpop.permute.xlu1 %545  ;;  %1403 = vmatpush1.bf16.msk.msra.mxu0 %vm1830_vm9, %v1401_v31  ;;  %1451 = vmatpush1.bf16.msk.msra.mxu1 %vm1830_vm9, %v1401_v31  ;;  %v1404_v36 = vpack.c.bf16 %v553_v32, %v538_v33  ;;  %v531_v37 = vpop.permute.xlu0 %530 }
  0x8f   : > { %v552_v38 = vsel %vm551_vm6, %v546_v35, %v1571_v28  ;;  %v537_v39 = vsel %vm536_vm5, %v531_v37, %v1566_v21  ;;  %vm603_vm5 = vcmask 785408   ;;  %vm629_vm6 = vcmask 760832  }
  0x90   : > { %v1407_v41 = vpack.c.bf16 %v552_v38, %v537_v39  ;;  %1406 = vmatprep.subr.msk.bf16.mxu0 %vm1841_vm12, %v1404_v36  ;;  %1454 = vmatprep.subr.msk.bf16.mxu1 %vm1841_vm12, %v1404_v36 }
  0x92   : > { %v1580_v42 = vpop.permute.xlu1 %1579  ;;  %1409 = vmatpush1.bf16.msk.msra.mxu0 %vm1851_vm13, %v1407_v41  ;;  %1457 = vmatpush1.bf16.msk.msra.mxu1 %vm1851_vm13, %v1407_v41  ;;  %v1575_v43 = vpop.permute.xlu0 %1574 }
  0x93   : > { %v1582_v44 = vunpack.i.h.bf16 %v1580_v42  ;;  %v1581_v45 = vunpack.i.l.bf16 %v1580_v42  ;;  %v1577_v46 = vunpack.i.h.bf16 %v1575_v43  ;;  %v1576_v47 = vunpack.i.l.bf16 %v1575_v43 }
  0x95   : > { %v694_v48 = vsel %vm692_vm14, %v1581_v45, %v1582_v44  ;;  %v566_v49 = vsel %vm564_vm15, %v1576_v47, %v1577_v46 }
  0x96   : > { %v687_v50 = vpop.permute.xlu1 %686  ;;  %v559_v51 = vpop.permute.xlu0 %558  ;;  %v1410_v52 = vpack.c.bf16 %v694_v48, %v566_v49 }
  0x97   : > { %v693_v53 = vsel %vm692_vm14, %v687_v50, %v1581_v45  ;;  %v565_v54 = vsel %vm564_vm15, %v559_v51, %v1576_v47  ;;  %vm655_vm14 = vcmask 637952   ;;  %vm1665_vm15 = vmmov 0  }
  0x98   : > { %v1413_v55 = vpack.c.bf16 %v693_v53, %v565_v54  ;;  %1412 = vmatprep.subr.msk.bf16.mxu0 %vm1822_vm4, %v1410_v52  ;;  %1460 = vmatprep.subr.msk.bf16.mxu1 %vm1822_vm4, %v1410_v52 }
  0x9a   : > { %v1590_v56 = vpop.permute.xlu1 %1589  ;;  %v1585_v57 = vpop.permute.xlu0 %1584  ;;  %1415 = vmatpush1.bf16.msk.msra.mxu0 %vm1830_vm9, %v1413_v55  ;;  %1463 = vmatpush1.bf16.msk.msra.mxu1 %vm1830_vm9, %v1413_v55 }
  0x9b   : > { %v1592_v58 = vunpack.i.h.bf16 %v1590_v56  ;;  %v1591_v59 = vunpack.i.l.bf16 %v1590_v56  ;;  %v1587_v60 = vunpack.i.h.bf16 %v1585_v57  ;;  %v1586_v61 = vunpack.i.l.bf16 %v1585_v57 }
  0x9d   : > { %v592_v62 = vsel %vm590_vm0, %v1591_v59, %v1592_v58  ;;  %v579_v63 = vsel %vm577_vm1, %v1586_v61, %v1587_v60 }
  0x9e   : > { %v585_v0 = vpop.permute.xlu1 %584  ;;  %v572_v1 = vpop.permute.xlu0 %571  ;;  %v1416_v2 = vpack.c.bf16 %v592_v62, %v579_v63 }
  0x9f   : > { %v591_v3 = vsel %vm590_vm0, %v585_v0, %v1591_v59  ;;  %v578_v6 = vsel %vm577_vm1, %v572_v1, %v1586_v61  ;;  %v724_v61 = vand.u32 7, %v1816_v12  ;;  %vm1012_vm1 = vcmask 519168  }
  0xa0   : > { %v1419_v7 = vpack.c.bf16 %v591_v3, %v578_v6  ;;  %1418 = vmatprep.subr.msk.bf16.mxu0 %vm1841_vm12, %v1416_v2  ;;  %1466 = vmatprep.subr.msk.bf16.mxu1 %vm1841_vm12, %v1416_v2 }
  0xa2   : > { %v1600_v8 = vpop.permute.xlu1 %1599  ;;  %v1595_v9 = vpop.permute.xlu0 %1594  ;;  %1421 = vmatpush1.bf16.msk.msra.mxu0 %vm1851_vm13, %v1419_v7  ;;  %1469 = vmatpush1.bf16.msk.msra.mxu1 %vm1851_vm13, %v1419_v7  ;;  %v765_v7 = vld [vmem:[%s1983_s2] sm:$0xf] }
  0xa3   : > { %v1602_v10 = vunpack.i.h.bf16 %v1600_v8  ;;  %v1601_v11 = vunpack.i.l.bf16 %v1600_v8  ;;  %v1597_v13 = vunpack.i.h.bf16 %v1595_v9  ;;  %v1596_v14 = vunpack.i.l.bf16 %v1595_v9 }
  0xa5   : > { %v705_v15 = vsel %vm703_vm2, %v1601_v11, %v1602_v10  ;;  %v605_v16 = vsel %vm603_vm5, %v1596_v14, %v1597_v13  ;;  %v1664_v10 = vmov 0.0|0.0  }
  0xa6   : > { %v698_v17 = vpop.permute.xlu1 %697  ;;  %v598_v18 = vpop.permute.xlu0 %597  ;;  %v1422_v19 = vpack.c.bf16 %v705_v15, %v605_v16 }
  0xa7   : > { %v704_v20 = vsel %vm703_vm2, %v698_v17, %v1601_v11  ;;  %v604_v21 = vsel %vm603_vm5, %v598_v18, %v1596_v14 }
  0xa8   : > { %v1425_v22 = vpack.c.bf16 %v704_v20, %v604_v21  ;;  %1424 = vmatprep.subr.msk.bf16.mxu0 %vm1822_vm4, %v1422_v19  ;;  %1472 = vmatprep.subr.msk.bf16.mxu1 %vm1822_vm4, %v1422_v19  ;;  %v931_v21 = vld [vmem:[%s1985_s4] sm:$0xf] }
  0xaa   : > { %v1610_v24 = vpop.permute.xlu1 %1609  ;;  %v1605_v25 = vpop.permute.xlu0 %1604  ;;  %1427 = vmatpush1.bf16.msk.msra.mxu0 %vm1830_vm9, %v1425_v22  ;;  %1475 = vmatpush1.bf16.msk.msra.mxu1 %vm1830_vm9, %v1425_v22  ;;  %v1014_v22 = vld [vmem:[%s1986_s5] sm:$0xf] }
  0xab   : > { %v1612_v26 = vunpack.i.h.bf16 %v1610_v24  ;;  %v1611_v27 = vunpack.i.l.bf16 %v1610_v24  ;;  %v1607_v28 = vunpack.i.h.bf16 %v1605_v25  ;;  %v1606_v29 = vunpack.i.l.bf16 %v1605_v25 }
  0xad   : > { %v631_v31 = vsel %vm629_vm6, %v1611_v27, %v1612_v26  ;;  %v618_v32 = vsel %vm616_vm7, %v1606_v29, %v1607_v28 }
  0xae   : > { %v624_v33 = vpop.permute.xlu1 %623  ;;  %v611_v35 = vpop.permute.xlu0 %610  ;;  %v1428_v36 = vpack.c.bf16 %v631_v31, %v618_v32 }
  0xaf   : > { %v630_v37 = vsel %vm629_vm6, %v624_v33, %v1611_v27  ;;  %v617_v38 = vsel %vm616_vm7, %v611_v35, %v1606_v29 }
  0xb0   : > { %v1431_v39 = vpack.c.bf16 %v630_v37, %v617_v38  ;;  %1430 = vmatprep.subr.msk.bf16.mxu0 %vm1841_vm12, %v1428_v36  ;;  %1478 = vmatprep.subr.msk.bf16.mxu1 %vm1841_vm12, %v1428_v36 }
  0xb2   : > { %v1620_v41 = vpop.permute.xlu1 %1619  ;;  %v1615_v42 = vpop.permute.xlu0 %1614  ;;  %1433 = vmatpush1.bf16.msk.msra.mxu0 %vm1851_vm13, %v1431_v39  ;;  %1481 = vmatpush1.bf16.msk.msra.mxu1 %vm1851_vm13, %v1431_v39 }
  0xb3   : > { %v1622_v43 = vunpack.i.h.bf16 %v1620_v41  ;;  %v1621_v44 = vunpack.i.l.bf16 %v1620_v41  ;;  %v1617_v45 = vunpack.i.h.bf16 %v1615_v42  ;;  %v1616_v46 = vunpack.i.l.bf16 %v1615_v42 }
  0xb5   : > { %v716_v47 = vsel %vm714_vm8, %v1621_v44, %v1622_v43  ;;  %v644_v48 = vsel %vm642_vm10, %v1616_v46, %v1617_v45 }
  0xb6   : > { %v709_v49 = vpop.permute.xlu1 %708  ;;  %v637_v50 = vpop.permute.xlu0 %636  ;;  %v1434_v51 = vpack.c.bf16 %v716_v47, %v644_v48 }
  0xb7   : > { %v715_v52 = vsel %vm714_vm8, %v709_v49, %v1621_v44  ;;  %v643_v53 = vsel %vm642_vm10, %v637_v50, %v1616_v46 }
  0xb8   : > { %v1437_v54 = vpack.c.bf16 %v715_v52, %v643_v53  ;;  %1436 = vmatprep.subr.msk.bf16.mxu0 %vm1822_vm4, %v1434_v51  ;;  %1484 = vmatprep.subr.msk.bf16.mxu1 %vm1822_vm4, %v1434_v51  ;;  %vm1908_vm4 = vcmp.ge.s32.totalorder %v724_v61, 1 }
  0xba   : > { %v1630_v55 = vpop.permute.xlu1 %1629  ;;  %v1625_v56 = vpop.permute.xlu0 %1624  ;;  %1439 = vmatpush1.bf16.msk.msra.mxu0 %vm1830_vm9, %v1437_v54  ;;  %1487 = vmatpush1.bf16.msk.msra.mxu1 %vm1830_vm9, %v1437_v54  ;;  %vm1926_vm9 = vmpackc.low %vm1663_vm3, %vm1908_vm4 }
  0xbb   : > { %v1632_v57 = vunpack.i.h.bf16 %v1630_v55  ;;  %v1631_v58 = vunpack.i.l.bf16 %v1630_v55  ;;  %v1627_v59 = vunpack.i.h.bf16 %v1625_v56  ;;  %v1626_v60 = vunpack.i.l.bf16 %v1625_v56 }
  0xbd   : > { %v670_v62 = vsel %vm668_vm11, %v1631_v58, %v1632_v57  ;;  %v657_v63 = vsel %vm655_vm14, %v1626_v60, %v1627_v59 }
  0xbe   : > { %v663_v23 = vpop.permute.xlu1 %662  ;;  %v650_v0 = vpop.permute.xlu0 %649  ;;  %v1440_v1 = vpack.c.bf16 %v670_v62, %v657_v63 }
  0xbf   : > { %v669_v2 = vsel %vm668_vm11, %v663_v23, %v1631_v58  ;;  %v656_v3 = vsel %vm655_vm14, %v650_v0, %v1626_v60 }
  0xc0   : > { %v1443_v6 = vpack.c.bf16 %v669_v2, %v656_v3  ;;  %1442 = vmatprep.subr.msk.bf16.mxu0 %vm1841_vm12, %v1440_v1  ;;  %1490 = vmatprep.subr.msk.bf16.mxu1 %vm1841_vm12, %v1440_v1  ;;  %vm1930_vm12 = vcmp.le.s32.totalorder %v724_v61, 6 }
  0xc1   : > { %vm1504_vm0 = vmpackc.low %vm1930_vm12, %vm1663_vm3  ;;  %vm938_vm3 = vcmask 588800  }
  0xc2   : > { %1445 = vmatpush1.bf16.msk.msra.mxu0 %vm1851_vm13, %v1443_v6  ;;  %1493 = vmatpush1.bf16.msk.msra.mxu1 %vm1851_vm13, %v1443_v6  ;;  %v757_v12 = vpop.permute.xlu0 %756  ;;  %v737_v8 = vpop.permute.xlu1 %736  ;;  %vm1500_vm13 = vmpackc.low %vm1908_vm4, %vm1930_vm12 }
  0xc3   : > { %v1495_v9 = vpack.c.bf16 %v757_v12, %v1789_v5  ;;  %1494 = vmatprep.subr.bf16.mxu0 %v1664_v10  ;;  %1510 = vmatprep.subr.bf16.mxu1 %v1664_v10 }
  0xc5   : > { %837 = vmatmul.mubr.f32.vlgmr.msra.gmra.mrb[0].mxu0 %v765_v7  ;;  %920 = vmatmul.mubr.f32.vlgmr.msra.gmra.mrb[0].mxu1 %v848_v34 }
  0xc6   : > { %1497 = vmatpush3.bf16.msk.msra.mxu0 %vm1926_vm9, %v1495_v9  ;;  %1513 = vmatpush3.bf16.msk.msra.mxu1 %vm1926_vm9, %v1495_v9  ;;  %v741_v5 = vpop.permute.xlu0 %740  ;;  %v745_v13 = vpop.permute.xlu1 %744 }
  0xc7   : > { %v1499_v14 = vpack.c.bf16 %v741_v5, %v737_v8  ;;  %1498 = vmatprep.subr.bf16.mxu0 %v1664_v10  ;;  %1514 = vmatprep.subr.bf16.mxu1 %v1664_v10 }
  0xc8   : > { %1374 = vmatprep.mubr.msk.f32.mxu0 %vm1665_vm15, %v1656_v4  ;;  %1395 = vmatprep.mubr.msk.f32.mxu1 %vm1665_vm15, %v1656_v4 }
  0xca   : > { %1501 = vmatpush3.bf16.msk.msra.mxu0 %vm1500_vm13, %v1499_v14  ;;  %1517 = vmatpush3.bf16.msk.msra.mxu1 %vm1500_vm13, %v1499_v14  ;;  %v760_v15 = vpop.permute.xlu0 %759  ;;  %v749_v17 = vpop.permute.xlu1 %748 }
  0xcb   : > { %v1503_v16 = vpack.c.bf16 %v745_v13, %v760_v15  ;;  %1502 = vmatprep.subr.bf16.mxu0 %v1664_v10  ;;  %1518 = vmatprep.subr.bf16.mxu1 %v1664_v10 }
  0xce   : > { %1505 = vmatpush3.bf16.msk.msra.mxu0 %vm1504_vm0, %v1503_v16  ;;  %1521 = vmatpush3.bf16.msk.msra.mxu1 %vm1504_vm0, %v1503_v16  ;;  %v763_v18 = vpop.permute.xlu0 %762  ;;  %v753_v20 = vpop.permute.xlu1 %752 }
  0xcf   : > { %v1507_v19 = vpack.c.bf16 %v763_v18, %v749_v17  ;;  %1506 = vmatprep.subr.bf16.mxu0 %v1664_v10  ;;  %1522 = vmatprep.subr.bf16.mxu1 %v1664_v10 }
  0xd2   : > { %1509 = vmatpush3.bf16.msk.msra.mxu0 %vm1926_vm9, %v1507_v19  ;;  %1525 = vmatpush3.bf16.msk.msra.mxu1 %vm1926_vm9, %v1507_v19 }
  0xd3   : > { %1372 = vmatprep.subr.mxu0 %v1656_v4  ;;  %1393 = vmatprep.subr.mxu1 %v1656_v4 }
  0xd6   : > { %1373 = vmatpush3.msk.msra.mxu0 %vm1930_vm12, %v753_v20  ;;  %1394 = vmatpush3.msk.msra.mxu1 %vm1930_vm12, %v753_v20 }
  0xd7   : > { %1375 = vmatmul.mubr.msk.f32.vlgmr.msra.gmra.mrb[2].mxu0 %vm938_vm3, %v931_v21  ;;  %1396 = vmatmul.mubr.msk.f32.vlgmr.msra.gmra.mrb[2].mxu1 %vm938_vm3, %v1014_v22 }
  0xdf   : > { %v853_v4 = vpop.permute.xlu1 %852  ;;  %v770_v24 = vpop.permute.xlu0 %769 }
  0xe3   : > { %v936_v37 = vpop.permute.xlu1 %935  ;;  %v1019_v38 = vpop.permute.xlu0 %1018 }
 0x198   : > { %v838_v25 = vpop.f32.mrb[0].mxu0  ;;  %v921_v26 = vpop.f32.mrb[0].mxu1 }
 0x199   : > { %v922_v27 = vadd.f32 %v921_v26, %v853_v4  ;;  %v839_v28 = vadd.f32 %v838_v25, %v770_v24  ;;  %v840_v29 = vpop.f32.mrb[1].mxu0  ;;  %v923_v31 = vpop.f32.mrb[1].mxu1 }
 0x19a   : > { %v841_v32 = vadd.f32 %v840_v29, %v770_v24  ;;  %v924_v33 = vadd.f32 %v923_v31, %v853_v4 }
 0x19c   : > { %v845_v35 = vcombine.low %v839_v28, %v841_v32  ;;  %v928_v36 = vcombine.low %v922_v27, %v924_v33 }
 0x19e   : > { %847 = vst [vmem:[%s477_s18] sm:$0xff] %v845_v35  ;;  %930 = vst [vmem:[%s482_s21] sm:$0xff] %v928_v36 }
 0x1aa   : > { %v1008_v39 = vpop.f32.mrb[2].mxu0  ;;  %v1090_v41 = vpop.f32.mrb[2].mxu1 }
 0x1ab   : > { %v1009_v42 = vadd.f32 %v1008_v39, %v936_v37  ;;  %v1091_v43 = vadd.f32 %v1090_v41, %v1019_v38  ;;  %v1376_v44 = vpop.f32.mrb[3].mxu0  ;;  %v1397_v45 = vpop.f32.mrb[3].mxu1 }
 0x1ad   : > { %1013 = vst.msk [vmem:[%s486_s23] sm:$0xf] %vm1012_vm1, %v1009_v42  ;;  %1094 = vst.msk [vmem:[%s490_s14] sm:$0xf] %vm1012_vm1, %v1091_v43 }
 0x1ae PF: > { %s24_s25 = sadd.s32 1, %s1641_s25  }
 0x1af   : > { %p21_p4 = scmp.ge.s32.totalorder %s24_s25, 4  }
 0x1b1   :  { %23 = sbr.rel (!%p21_p4) target bundleno = 1 (0x1), region = 129 }

</bundles_post_ra>
